<compile_context>
chip_gen: v5e
topology: v5e:2x2
jax: 0.10.0
libtpu: 0.0.40
codegen_flags: <defaults>
</compile_context>

<pallas_src>
import jax
import jax.numpy as jnp
from jax import lax
from jax.experimental import pallas as pl
from jax.experimental.pallas import tpu as pltpu

_LANE = 128
_SUBLANE = 8
_MAX_TM = 2048  # batch-tile cap (review: 1024-2048, VMEM permitting)


def _round_up(n: int, m: int) -> int:
    return ((n + m - 1) // m) * m


def _vmem_policy():
    """Generation-aware (physical, compiler-limit, planning-budget) in bytes."""
    try:
        phys = int(getattr(pltpu.get_tpu_info(), "vmem_capacity_bytes"))
    except Exception:
        phys = 64 * 1024 * 1024  # conservative default (v7x per-TC size)
    if phys >= 96 * 1024 * 1024:                  # v5e / v6e: 128 MiB physical
        vmem_limit = phys - 16 * 1024 * 1024      # ~112 MiB
    else:                                         # v7x: 64 MiB physical
        vmem_limit = phys - 10 * 1024 * 1024      # ~54 MiB
    budget = vmem_limit - 6 * 1024 * 1024         # Mosaic internal-scratch margin
    return phys, vmem_limit, budget


def _make_mlp_kernel(num_linear_layers: int, act_dtype, precision):
    """Fused MLP kernel.

    Ref order: (x, w0, b0, w1, b1, ..., w_{L-1}, b_{L-1}, out).
    Each layer: f32 MXU accumulation + f32 bias add; ReLU on all but the last
    layer, after which the activation is cast back to `act_dtype` once so the
    carried activation stays narrow (halves spill / VMEM traffic for bf16).
    """

    def kernel(*refs):
        x_ref = refs[0]
        o_ref = refs[-1]
        param_refs = refs[1:-1]
        assert len(param_refs) == 2 * num_linear_layers

        h = x_ref[...]                               # (tm, d0_pad), act_dtype
        for layer in range(num_linear_layers):
            w = param_refs[2 * layer][...]           # (d_in_pad, d_out_pad)
            b = param_refs[2 * layer + 1][...]       # (1, d_out_pad), f32
            acc = jnp.dot(h, w, preferred_element_type=jnp.float32,
                          precision=precision)
            acc = acc + b
            if layer < num_linear_layers - 1:
                h = jnp.maximum(acc, 0.0).astype(act_dtype)   # ReLU, cast once
            else:
                o_ref[...] = acc.astype(o_ref.dtype)

    return kernel


def mlp_forward(x, weights, biases, *, param_dtype=None, block_rows=None,
                vmem_budget_bytes=None, interpret=False):
    """Run the fused MLP Pallas kernel.

    x:       (batch, input_dims)
    weights: list, weights[i] has shape (d_in_i, d_out_i)
    biases:  list, biases[i] has shape (d_out_i,)
    param_dtype: dtype for weights / carried activations fed to the MXU.
                 Pass jnp.bfloat16 on v6e/v7x for the fast MXU path and half
                 the resident weight bytes; accumulation is always f32.
                 Defaults to the weights' dtype (preserves module semantics).
    """
    num_layers = len(weights)
    if num_layers == 0 or len(biases) != num_layers:
        raise ValueError("need matching, non-empty weights/biases lists")

    batch, in_dims = x.shape

    # --- validate the layer chain (mismatches would otherwise be silently
    #     zero-padded into wrong contractions) -------------------------------
    dims = [in_dims]
    for l, (w, b) in enumerate(zip(weights, biases)):
        if w.ndim != 2 or w.shape[0] != dims[-1]:
            raise ValueError(
                f"layer {l}: weight shape {w.shape} incompatible with input "
                f"dim {dims[-1]} (expect (d_in, d_out))")
        if b.shape != (w.shape[1],):
            raise ValueError(f"layer {l}: bias shape {b.shape} != ({w.shape[1]},)")
        dims.append(int(w.shape[1]))
    out_dims = dims[-1]

    if param_dtype is None:
        param_dtype = weights[0].dtype
    param_dtype = jnp.dtype(param_dtype)
    out_dtype = x.dtype
    precision = (lax.Precision.HIGHEST
                 if param_dtype == jnp.dtype(jnp.float32) else None)

    # --- lane-dense padding of every feature dim to a multiple of 128 -------
    dims_pad = [_round_up(d, _LANE) for d in dims]

    w_pad, b_pad = [], []
    for l, (w, b) in enumerate(zip(weights, biases)):
        d_in_p, d_out_p = dims_pad[l], dims_pad[l + 1]
        wp = w.astype(param_dtype)
        if (d_in_p, d_out_p) != wp.shape:
            wp = jnp.pad(wp, ((0, d_in_p - wp.shape[0]),
                              (0, d_out_p - wp.shape[1])))
        bp = b.astype(jnp.float32).reshape(1, -1)
        if bp.shape[1] != d_out_p:
            bp = jnp.pad(bp, ((0, 0), (0, d_out_p - bp.shape[1])))
        w_pad.append(wp)
        b_pad.append(bp)

    # --- VMEM accounting & batch-tile selection ------------------------------
    phys, vmem_limit, budget = _vmem_policy()
    if vmem_budget_bytes is not None:
        budget = int(vmem_budget_bytes)
        vmem_limit = min(phys - 4 * 1024 * 1024, max(vmem_limit, budget))

    p_bytes = param_dtype.itemsize
    o_bytes = jnp.dtype(out_dtype).itemsize
    weight_bytes = sum(int(wp.size) * p_bytes for wp in w_pad)
    bias_bytes = sum(int(bp.size) * 4 for bp in b_pad)
    # Pallas double-buffers every input BlockSpec, including the constant-index
    # weight/bias blocks -> count them 2x so we never blow physical VMEM (v7x).
    resident = 2 * (weight_bytes + bias_bytes)

    max_dim = max(dims_pad)
    per_row = (2 * dims_pad[0] * p_bytes          # double-buffered x tile
               + 2 * dims_pad[-1] * o_bytes       # double-buffered out tile
               + 2 * max_dim * (4 + p_bytes))     # live f32 acc + act headroom

    avail = budget - resident
    if avail < per_row * _SUBLANE:
        # TODO(synk): stage weights per layer (layer/K grid axis with a
        # pl.when-initialized accumulator, or pltpu.emit_pipeline over
        # memory_space=pl.ANY weights) when they don't fit VMEM residently.
        raise NotImplementedError(
            f"Padded MLP weights need ~{resident} B of VMEM (double-buffered) "
            f"but the budget is {budget} B; weight staging not implemented.")

    batch8 = _round_up(batch, _SUBLANE)
    if block_rows is None:
        tm = (avail // per_row // _SUBLANE) * _SUBLANE
        tm = int(max(_SUBLANE, min(_MAX_TM, tm)))
    else:
        tm = max(_SUBLANE, _round_up(int(block_rows), _SUBLANE))
    # Megacore: keep >= 2 grid steps when possible so ("parallel",) shards the
    # batch axis across v7x's two TensorCores.
    if batch8 >= 2 * _SUBLANE:
        tm = min(tm, _round_up(pl.cdiv(batch8, 2), _SUBLANE))
    tm = min(tm, batch8)

    grid = (pl.cdiv(batch, tm),)  # partial last block is masked by Pallas

    # --- x: cast / lane-pad only when needed (no row padding) ---------------
    xp = x.astype(param_dtype)
    if dims_pad[0] != in_dims:
        xp = jnp.pad(xp, ((0, 0), (0, dims_pad[0] - in_dims)))

    # --- BlockSpecs: batch-tiled x/out, VMEM-resident weights/biases --------
    in_specs = [pl.BlockSpec((tm, dims_pad[0]), lambda i: (i, 0))]
    args = [xp]
    for wp, bp in zip(w_pad, b_pad):
        in_specs.append(pl.BlockSpec(wp.shape, lambda i: (0, 0)))
        in_specs.append(pl.BlockSpec(bp.shape, lambda i: (0, 0)))
        args.append(wp)
        args.append(bp)
    out_spec = pl.BlockSpec((tm, dims_pad[-1]), lambda i: (i, 0))

    flops = 2 * batch * sum(dims_pad[l] * dims_pad[l + 1]
                            for l in range(num_layers))
    bytes_accessed = (int(xp.size) * p_bytes + weight_bytes + bias_bytes
                      + batch * dims_pad[-1] * o_bytes)

    kernel = _make_mlp_kernel(num_layers, param_dtype, precision)
    out_padded = pl.pallas_call(
        kernel,
        out_shape=jax.ShapeDtypeStruct((batch, dims_pad[-1]), out_dtype),
        grid=grid,
        in_specs=in_specs,
        out_specs=out_spec,
        compiler_params=pltpu.CompilerParams(
            dimension_semantics=("parallel",),
            vmem_limit_bytes=int(vmem_limit),
        ),
        cost_estimate=pl.CostEstimate(
            flops=int(flops), transcendentals=0,
            bytes_accessed=int(bytes_accessed)),
        interpret=interpret,
    )(*args)

    if dims_pad[-1] != out_dims:
        return out_padded[:, :out_dims]
    return out_padded


def init_mlp_params(key, input_dims, output_dims, hidden_dims, num_layers):
    """Deterministic init mimicking torch.nn.Linear default U[-1/sqrt(fan_in), +]."""
    if num_layers == 0:
        dims = [input_dims, output_dims]
    else:
        dims = [input_dims] + [hidden_dims] * num_layers + [output_dims]
    weights, biases = [], []
    for d_in, d_out in zip(dims[:-1], dims[1:]):
        key, kw, kb = jax.random.split(key, 3)
        bound = 1.0 / (d_in ** 0.5)
        weights.append(jax.random.uniform(kw, (d_in, d_out), jnp.float32,
                                          -bound, bound))
        biases.append(jax.random.uniform(kb, (d_out,), jnp.float32,
                                         -bound, bound))
    return weights, biases


def mlp_reference(x, weights, biases):
    """Plain-JAX reference matching the PyTorch module semantics (full f32)."""
    h = x
    for i, (w, b) in enumerate(zip(weights, biases)):
        h = jnp.dot(h, w, precision=lax.Precision.HIGHEST) + b
        if i < len(weights) - 1:
            h = jnp.maximum(h, 0.0)
    return h


if __name__ == "__main__":
    # MLP(input_dims=16, output_dims=8, hidden_dims=32, num_layers=2,
    #     activation=nn.ReLU, batch_norm=False)
    input_dims, output_dims, hidden_dims, num_layers = 16, 8, 32, 2
    batch = 64

    key = jax.random.PRNGKey(0)
    key, kx = jax.random.split(key)
    x = jax.random.normal(kx, (batch, input_dims), jnp.float32)

    weights, biases = init_mlp_params(
        key, input_dims, output_dims, hidden_dims, num_layers
    )
    ref = mlp_reference(x, weights, biases)

    # Keep the wrapper under jit so pad/cast/slice fuse with the kernel.
    fwd_f32 = jax.jit(lambda xx, ws, bs: mlp_forward(xx, ws, bs))
    fwd_bf16 = jax.jit(
        lambda xx, ws, bs: mlp_forward(xx, ws, bs, param_dtype=jnp.bfloat16))

    # f32 path: near-exact vs reference (precision=HIGHEST in the kernel).
    out = jax.block_until_ready(fwd_f32(x, weights, biases))
    assert out.shape == (batch, output_dims), out.shape
    assert jnp.allclose(out, ref, atol=1e-4, rtol=1e-4), "f32 mismatch vs reference"

    # Ragged batch (not a multiple of the tile): exercises the masked last block.
    x_odd = x[:50]
    ref_odd = mlp_reference(x_odd, weights, biases)
    out_odd = jax.block_until_ready(fwd_f32(x_odd, weights, biases))
    assert out_odd.shape == (50, output_dims), out_odd.shape
    assert jnp.allclose(out_odd, ref_odd, atol=1e-4, rtol=1e-4), \
        "ragged-batch mismatch vs reference"

    # Mixed-precision path: bf16 weights/activations, f32 MXU accumulation.
    out_bf16 = jax.block_until_ready(fwd_bf16(x, weights, biases))
    assert out_bf16.shape == (batch, output_dims), out_bf16.shape
    assert bool(jnp.all(jnp.isfinite(out_bf16)))
    assert jnp.allclose(out_bf16, ref, atol=1e-1, rtol=1e-1), "bf16 path diverged"

    print("KERNEL_OK")
</pallas_src>

<mosaic_0001>
module attributes {stable_mosaic.version = 11 : i64} {
  func.func @kernel(%arg0: i32, %arg1: memref<32x128xf32, #tpu.memory_space<vmem>>, %arg2: memref<128x128xf32, #tpu.memory_space<vmem>>, %arg3: memref<1x128xf32, #tpu.memory_space<vmem>>, %arg4: memref<128x128xf32, #tpu.memory_space<vmem>>, %arg5: memref<1x128xf32, #tpu.memory_space<vmem>>, %arg6: memref<128x128xf32, #tpu.memory_space<vmem>>, %arg7: memref<1x128xf32, #tpu.memory_space<vmem>>, %arg8: memref<32x128xf32, #tpu.memory_space<vmem>>) attributes {dimension_semantics = [#tpu.dimension_semantics<parallel>], iteration_bounds = array<i64: 2>, scalar_prefetch = 0 : i64, scratch_operands = 0 : i64, tpu.core_type = #tpu.core_type<tc>, window_params = [{transform_indices = @transform_0, window_bounds = array<i64: 32, 128>}, {pipeline_mode = #tpu.pipeline_mode<synchronous>, transform_indices = @transform_1, window_bounds = array<i64: 128, 128>}, {pipeline_mode = #tpu.pipeline_mode<synchronous>, transform_indices = @transform_2, window_bounds = array<i64: 1, 128>}, {pipeline_mode = #tpu.pipeline_mode<synchronous>, transform_indices = @transform_3, window_bounds = array<i64: 128, 128>}, {pipeline_mode = #tpu.pipeline_mode<synchronous>, transform_indices = @transform_4, window_bounds = array<i64: 1, 128>}, {pipeline_mode = #tpu.pipeline_mode<synchronous>, transform_indices = @transform_5, window_bounds = array<i64: 128, 128>}, {pipeline_mode = #tpu.pipeline_mode<synchronous>, transform_indices = @transform_6, window_bounds = array<i64: 1, 128>}, {transform_indices = @transform_7, window_bounds = array<i64: 32, 128>}]} {
    %c0 = arith.constant 0 : index
    %c0_0 = arith.constant 0 : index
    %0 = vector.load %arg1[%c0, %c0_0] : memref<32x128xf32, #tpu.memory_space<vmem>>, vector<32x128xf32>
    %c0_1 = arith.constant 0 : index
    %c0_2 = arith.constant 0 : index
    %1 = vector.load %arg2[%c0_1, %c0_2] : memref<128x128xf32, #tpu.memory_space<vmem>>, vector<128x128xf32>
    %c0_3 = arith.constant 0 : index
    %c0_4 = arith.constant 0 : index
    %2 = vector.load %arg3[%c0_3, %c0_4] : memref<1x128xf32, #tpu.memory_space<vmem>>, vector<1x128xf32>
    %cst = arith.constant dense<0.000000e+00> : vector<32x128xf32>
    %3 = tpu.matmul %0, %1, %cst {dimension_numbers = #tpu.dot_dimension_numbers<[1], [0], [0], [1], [0, 0, 1, 1], [], []>, precision = #tpu.contract_precision<fp32>} : vector<32x128xf32>, vector<128x128xf32>, vector<32x128xf32> -> vector<32x128xf32>
    %4 = vector.broadcast %2 : vector<1x128xf32> to vector<32x128xf32>
    %5 = arith.addf %3, %4 : vector<32x128xf32>
    %cst_5 = arith.constant 0.000000e+00 : f32
    %6 = vector.broadcast %cst_5 : f32 to vector<32x128xf32>
    %7 = arith.maximumf %5, %6 : vector<32x128xf32>
    %c0_6 = arith.constant 0 : index
    %c0_7 = arith.constant 0 : index
    %8 = vector.load %arg4[%c0_6, %c0_7] : memref<128x128xf32, #tpu.memory_space<vmem>>, vector<128x128xf32>
    %c0_8 = arith.constant 0 : index
    %c0_9 = arith.constant 0 : index
    %9 = vector.load %arg5[%c0_8, %c0_9] : memref<1x128xf32, #tpu.memory_space<vmem>>, vector<1x128xf32>
    %cst_10 = arith.constant dense<0.000000e+00> : vector<32x128xf32>
    %10 = tpu.matmul %7, %8, %cst_10 {dimension_numbers = #tpu.dot_dimension_numbers<[1], [0], [0], [1], [0, 0, 1, 1], [], []>, precision = #tpu.contract_precision<fp32>} : vector<32x128xf32>, vector<128x128xf32>, vector<32x128xf32> -> vector<32x128xf32>
    %11 = vector.broadcast %9 : vector<1x128xf32> to vector<32x128xf32>
    %12 = arith.addf %10, %11 : vector<32x128xf32>
    %cst_11 = arith.constant 0.000000e+00 : f32
    %13 = vector.broadcast %cst_11 : f32 to vector<32x128xf32>
    %14 = arith.maximumf %12, %13 : vector<32x128xf32>
    %c0_12 = arith.constant 0 : index
    %c0_13 = arith.constant 0 : index
    %15 = vector.load %arg6[%c0_12, %c0_13] : memref<128x128xf32, #tpu.memory_space<vmem>>, vector<128x128xf32>
    %c0_14 = arith.constant 0 : index
    %c0_15 = arith.constant 0 : index
    %16 = vector.load %arg7[%c0_14, %c0_15] : memref<1x128xf32, #tpu.memory_space<vmem>>, vector<1x128xf32>
    %cst_16 = arith.constant dense<0.000000e+00> : vector<32x128xf32>
    %17 = tpu.matmul %14, %15, %cst_16 {dimension_numbers = #tpu.dot_dimension_numbers<[1], [0], [0], [1], [0, 0, 1, 1], [], []>, precision = #tpu.contract_precision<fp32>} : vector<32x128xf32>, vector<128x128xf32>, vector<32x128xf32> -> vector<32x128xf32>
    %18 = vector.broadcast %16 : vector<1x128xf32> to vector<32x128xf32>
    %19 = arith.addf %17, %18 : vector<32x128xf32>
    %c0_17 = arith.constant 0 : index
    %c0_18 = arith.constant 0 : index
    %20 = vector.load %arg8[%c0_17, %c0_18] : memref<32x128xf32, #tpu.memory_space<vmem>>, vector<32x128xf32>
    tpu.vector_store %arg8[%c0_17, %c0_18], %19 {strides = array<i32>} : memref<32x128xf32, #tpu.memory_space<vmem>>, vector<32x128xf32>,
    return
  }
  func.func @transform_0(%arg0: i32) -> (i32, i32) {
    %c0_i32 = arith.constant 0 : i32
    %c0_i32_0 = arith.constant 0 : i32
    return %arg0, %c0_i32 : i32, i32
  }
  func.func @transform_1(%arg0: i32) -> (i32, i32) {
    %c0_i32 = arith.constant 0 : i32
    %c0_i32_0 = arith.constant 0 : i32
    %c0_i32_1 = arith.constant 0 : i32
    return %c0_i32, %c0_i32_0 : i32, i32
  }
  func.func @transform_2(%arg0: i32) -> (i32, i32) {
    %c0_i32 = arith.constant 0 : i32
    %c0_i32_0 = arith.constant 0 : i32
    %c0_i32_1 = arith.constant 0 : i32
    return %c0_i32, %c0_i32_0 : i32, i32
  }
  func.func @transform_3(%arg0: i32) -> (i32, i32) {
    %c0_i32 = arith.constant 0 : i32
    %c0_i32_0 = arith.constant 0 : i32
    %c0_i32_1 = arith.constant 0 : i32
    return %c0_i32, %c0_i32_0 : i32, i32
  }
  func.func @transform_4(%arg0: i32) -> (i32, i32) {
    %c0_i32 = arith.constant 0 : i32
    %c0_i32_0 = arith.constant 0 : i32
    %c0_i32_1 = arith.constant 0 : i32
    return %c0_i32, %c0_i32_0 : i32, i32
  }
  func.func @transform_5(%arg0: i32) -> (i32, i32) {
    %c0_i32 = arith.constant 0 : i32
    %c0_i32_0 = arith.constant 0 : i32
    %c0_i32_1 = arith.constant 0 : i32
    return %c0_i32, %c0_i32_0 : i32, i32
  }
  func.func @transform_6(%arg0: i32) -> (i32, i32) {
    %c0_i32 = arith.constant 0 : i32
    %c0_i32_0 = arith.constant 0 : i32
    %c0_i32_1 = arith.constant 0 : i32
    return %c0_i32, %c0_i32_0 : i32, i32
  }
  func.func @transform_7(%arg0: i32) -> (i32, i32) {
    %c0_i32 = arith.constant 0 : i32
    %c0_i32_0 = arith.constant 0 : i32
    return %arg0, %c0_i32 : i32, i32
  }
}

</mosaic_0001>

<bundles_post_ra>
// kernel: _lambda_.1
= control target key start
LH: loop header
LB: loop body
LE: loop exit
PB: predicated region body
PF: predicated region fallthrough
CT: control target
= control target key end

     0   :  { %s1818_s24 = smov 0   ;;  %s2715_s0 = inlined_call_operand.vmem [shape: f32[64,128], index: 0, kind: input, shape index: {}]   ;;  %s2716_s1 = inlined_call_operand.vmem [shape: f32[128,128], index: 1, kind: input, shape index: {}]   ;;  %s2717_s2 = inlined_call_operand.vmem [shape: f32[1,128], index: 2, kind: input, shape index: {}]   ;;  %s2718_s3 = inlined_call_operand.vmem [shape: f32[128,128], index: 3, kind: input, shape index: {}]   ;;  %s2719_s4 = inlined_call_operand.vmem [shape: f32[1,128], index: 4, kind: input, shape index: {}]   ;;  %s2720_s5 = inlined_call_operand.vmem [shape: f32[128,128], index: 5, kind: input, shape index: {}]   ;;  %s2721_s6 = inlined_call_operand.vmem [shape: f32[1,128], index: 6, kind: input, shape index: {}]   ;;  %s2722_s7 = inlined_call_operand.vmem [shape: f32[64,128], index: 7, kind: output, shape index: {}]  }
   0x1 LB: > { %s1716_s25 = sadd.s32 4294967295, %s1776_s24   ;;  %p1720_p0 = scmp.ge.s32.totalorder %s1776_s24, 1  ;;  %s1776_s24 = sphi %s1818_s24, %s17_s24  }
   0x2   : > { %p238_p1 = scmp.lt.s32.totalorder %s1776_s24, 3 }
   0x4   : > { %p239_p2 = pnand %p1720_p0, %p238_p1 }
   0x5   : > { %s1721_s9 = sshll.u32 (!%p239_p2), %s1716_s25, 2 }
   0x6   : > { %242 = sbr.rel (%p239_p2) target bundleno = 577 (0x241), region = 48  ;;  %p271_p3 = scmp.lt.s32.totalorder (!%p239_p2), %s1721_s9, 7 }
   0xb   : > { %v301_v0 = vld [vmem:[%s2716_s1 + $0x78] sm:$0xff]  ;;  %v300_v1 = vld [vmem:[%s2716_s1 + $0x70] sm:$0xff]  ;;  %v299_v2 = vld [vmem:[%s2716_s1 + $0x68] sm:$0xff]  ;;  %s2730_s9 = smov (!%p271_p3, %s1721_s9), 7 }
   0xc   : > { %v1835_v3 = vand.u32 4294901760, %v301_v0  ;;  %v1837_v4 = vand.u32 4294901760, %v300_v1  ;;  %v1839_v5 = vand.u32 4294901760, %v299_v2  ;;  %v298_v6 = vld [vmem:[%s2716_s1 + $0x60] sm:$0xff]  ;;  %v297_v7 = vld [vmem:[%s2716_s1 + $0x58] sm:$0xff]  ;;  %v296_v8 = vld [vmem:[%s2716_s1 + $0x50] sm:$0xff] }
   0xd   : > { %v1850_v9 = vand.u32 4294901760, %v298_v6  ;;  %v1852_v10 = vand.u32 4294901760, %v297_v7  ;;  %v1854_v11 = vand.u32 4294901760, %v296_v8  ;;  %v295_v12 = vld [vmem:[%s2716_s1 + $0x48] sm:$0xff]  ;;  %v294_v13 = vld [vmem:[%s2716_s1 + $0x40] sm:$0xff]  ;;  %v293_v18 = vld [vmem:[%s2716_s1 + $0x38] sm:$0xff] }
   0xe   : > { %307 = vmatpush.msra.mxu0 %v1835_v3  ;;  %v1864_v14 = vsub.f32 %v301_v0, %v1835_v3  ;;  %v1867_v15 = vsub.f32 %v300_v1, %v1837_v4  ;;  %554 = vmatpush.msra.mxu3 %v1835_v3  ;;  %v1871_v16 = vsub.f32 %v299_v2, %v1839_v5  ;;  %v1873_v17 = vand.u32 4294901760, %v295_v12  ;;  %v292_v29 = vld [vmem:[%s2716_s1 + $0x30] sm:$0xff]  ;;  %v291_v36 = vld [vmem:[%s2716_s1 + $0x28] sm:$0xff]  ;;  %s1722_s27 = sshll.u32 %s2730_s9, 3  ;;  %v290_v43 = vld [vmem:[%s2716_s1 + $0x20] sm:$0xff] }
   0xf   : > { %v1879_v19 = vsub.f32 %v298_v6, %v1850_v9  ;;  %v1882_v20 = vsub.f32 %v297_v7, %v1852_v10  ;;  %v1884_v21 = vand.u32 4294901760, %v294_v13  ;;  %v1887_v22 = vsub.f32 %v296_v8, %v1854_v11  ;;  %s1953_s10 = scalar_lea.vmem %s2715_s0, %s1722_s27  ;;  %v289_v49 = vld [vmem:[%s2716_s1 + $0x18] sm:$0xff]  ;;  %v288_v55 = vld [vmem:[%s2716_s1 + $0x10] sm:$0xff]  ;;  %v287_v62 = vld [vmem:[%s2716_s1 + $0x8] sm:$0xff]  ;;  %s280_s11 = scalar_lea.vmem %s2722_s7, %s1722_s27 }
  0x10   : > { %309 = vmatpush.msra.mxu0 %v1837_v4  ;;  %486 = vmatpush.msra.mxu2 %v1864_v14  ;;  %v373_v23 = vand.u32 4294901760, %v1864_v14  ;;  %v379_v24 = vand.u32 4294901760, %v1867_v15  ;;  %v385_v25 = vand.u32 4294901760, %v1871_v16  ;;  %v1898_v27 = vand.u32 4294901760, %v293_v18  ;;  %v282_v56 = vld [vmem:[%s1953_s10] sm:$0xff] }
  0x11   : > { %556 = vmatpush.msra.mxu3 %v1837_v4  ;;  %v391_v26 = vand.u32 4294901760, %v1879_v19  ;;  %v1901_v28 = vsub.f32 %v295_v12, %v1873_v17  ;;  %v397_v33 = vand.u32 4294901760, %v1882_v20  ;;  %v403_v34 = vand.u32 4294901760, %v1887_v22  ;;  %v286_v8 = vld [vmem:[%s2716_s1] sm:$0xff] }
  0x12   : > { %311 = vmatpush.msra.mxu0 %v1839_v5  ;;  %489 = vmatpush.msra.mxu2 %v1867_v15  ;;  %v374_v30 = vsub.f32 %v1864_v14, %v373_v23  ;;  %v380_v31 = vsub.f32 %v1867_v15, %v379_v24  ;;  %v386_v32 = vsub.f32 %v1871_v16, %v385_v25  ;;  %v1932_v40 = vand.u32 4294901760, %v292_v29 }
  0x13   : > { %558 = vmatpush.msra.mxu3 %v1839_v5  ;;  %v1921_v35 = vsub.f32 %v294_v13, %v1884_v21  ;;  %v392_v39 = vsub.f32 %v1879_v19, %v391_v26  ;;  %v409_v41 = vand.u32 4294901760, %v1901_v28  ;;  %v1937_v42 = vsub.f32 %v293_v18, %v1898_v27 }
  0x14   : > { %313 = vmatpush.msra.mxu0 %v1850_v9  ;;  %v375_v37 = vand.u32 4294901760, %v374_v30  ;;  %492 = vmatpush.msra.mxu2 %v1871_v16  ;;  %v381_v38 = vand.u32 4294901760, %v380_v31  ;;  %v387_v44 = vand.u32 4294901760, %v386_v32  ;;  %v398_v45 = vsub.f32 %v1882_v20, %v397_v33  ;;  %v283_v30 = vld [vmem:[%s1953_s10 + $0x8] sm:$0xff] }
  0x15   : > { %560 = vmatpush.msra.mxu3 %v1850_v9  ;;  %v1946_v46 = vand.u32 4294901760, %v291_v36  ;;  %v404_v47 = vsub.f32 %v1887_v22, %v403_v34  ;;  %v415_v48 = vand.u32 4294901760, %v1921_v35  ;;  %v393_v50 = vand.u32 4294901760, %v392_v39 }
  0x16   : > { %315 = vmatpush.msra.mxu0 %v1852_v10  ;;  %376 = vmatpush.msra.mxu1 %v375_v37  ;;  %v1965_v51 = vand.u32 4294901760, %v290_v43  ;;  %v1968_v52 = vsub.f32 %v292_v29, %v1932_v40  ;;  %v410_v53 = vsub.f32 %v1901_v28, %v409_v41  ;;  %v421_v54 = vand.u32 4294901760, %v1937_v42 }
  0x17   : > { %495 = vmatpush.msra.mxu2 %v1879_v19  ;;  %562 = vmatpush.msra.mxu3 %v1852_v10  ;;  %v399_v57 = vand.u32 4294901760, %v398_v45  ;;  %v1981_v58 = vand.u32 4294901760, %v289_v49  ;;  %v1984_v59 = vsub.f32 %v291_v36, %v1946_v46  ;;  %v405_v60 = vand.u32 4294901760, %v404_v47 }
  0x18   : > { %317 = vmatpush.msra.mxu0 %v1854_v11  ;;  %382 = vmatpush.msra.mxu1 %v381_v38  ;;  %v416_v61 = vsub.f32 %v1921_v35, %v415_v48  ;;  %v1995_v63 = vand.u32 4294901760, %v288_v55  ;;  %v427_v0 = vand.u32 4294901760, %v1968_v52  ;;  %v1999_v1 = vsub.f32 %v290_v43, %v1965_v51 }
  0x19   : > { %498 = vmatpush.msra.mxu2 %v1882_v20  ;;  %564 = vmatpush.msra.mxu3 %v1854_v11  ;;  %v2001_v2 = vand.u32 4294901760, %v282_v56  ;;  %v411_v6 = vand.u32 4294901760, %v410_v53  ;;  %v422_v7 = vsub.f32 %v1937_v42, %v421_v54  ;;  %v2012_v12 = vand.u32 4294901760, %v287_v62  ;;  %v758_v20 = vld [vmem:[%s2718_s3 + $0x70] sm:$0xff] }
  0x1a   : > { %319 = vmatpush.msra.mxu0 %v1873_v17  ;;  %388 = vmatpush.msra.mxu1 %v387_v44  ;;  %v433_v13 = vand.u32 4294901760, %v1984_v59  ;;  %v2016_v18 = vsub.f32 %v289_v49, %v1981_v58  ;;  %v417_v31 = vand.u32 4294901760, %v416_v61  ;;  %v428_v32 = vsub.f32 %v1968_v52, %v427_v0 }
  0x1b   : > { %501 = vmatpush.msra.mxu2 %v1887_v22  ;;  %566 = vmatpush.msra.mxu3 %v1873_v17  ;;  %v2019_v29 = vsub.f32 %v282_v56, %v2001_v2  ;;  %v2028_v36 = vand.u32 4294901760, %v286_v8  ;;  %v439_v37 = vand.u32 4294901760, %v1999_v1  ;;  %v2032_v38 = vsub.f32 %v288_v55, %v1995_v63 }
  0x1c   : > { %321 = vmatpush.msra.mxu0 %v1884_v21  ;;  %394 = vmatpush.msra.mxu1 %v393_v50  ;;  %v2037_v43 = vand.u32 4294901760, %v283_v30  ;;  %v423_v44 = vand.u32 4294901760, %v422_v7  ;;  %v434_v45 = vsub.f32 %v1984_v59, %v433_v13  ;;  %v2725_v47 = vand.u32 4294901760, %v2016_v18  ;;  %v284_v7 = vld [vmem:[%s1953_s10 + $0x10] sm:$0xff] }
  0x1d   : > { %504 = vmatpush.msra.mxu2 %v1901_v28  ;;  %568 = vmatpush.msra.mxu3 %v1884_v21  ;;  %v340_v39 = vand.u32 4294901760, %v2019_v29  ;;  %v2045_v49 = vsub.f32 %v287_v62, %v2012_v12  ;;  %v429_v50 = vand.u32 4294901760, %v428_v32  ;;  %v440_v53 = vsub.f32 %v1999_v1, %v439_v37 }
  0x1e   : > { %323 = vmatpush.msra.mxu0 %v1898_v27  ;;  %400 = vmatpush.msra.mxu1 %v399_v57  ;;  %v2723_v55 = vand.u32 4294901760, %v2032_v38  ;;  %v2055_v56 = vsub.f32 %v286_v8, %v2028_v36  ;;  %v435_v61 = vand.u32 4294901760, %v434_v45  ;;  %v446_v62 = vsub.f32 %v2016_v18, %v2725_v47  ;;  %v285_v47 = vld [vmem:[%s1953_s10 + $0x18] sm:$0xff] }
  0x1f   : > { %507 = vmatpush.msra.mxu2 %v1921_v35  ;;  %570 = vmatpush.msra.mxu3 %v1898_v27  ;;  %v341_v57 = vsub.f32 %v2019_v29, %v340_v39  ;;  %v441_v8 = vand.u32 4294901760, %v440_v53  ;;  %v2076_v45 = vand.u32 4294901760, %v284_v7  ;;  %v2162_v22 = vand.u32 4294901760, %v758_v20 }
  0x20   : > { %325 = vmatpush.msra.mxu0 %v1932_v40  ;;  %406 = vmatpush.msra.mxu1 %v405_v60  ;;  %v347_v60 = vsub.f32 %v283_v30, %v2037_v43  ;;  %v452_v30 = vsub.f32 %v2032_v38, %v2723_v55 }
  0x21   : > { %510 = vmatpush.msra.mxu2 %v1937_v42  ;;  %572 = vmatpush.msra.mxu3 %v1932_v40  ;;  %v342_v32 = vand.u32 4294901760, %v341_v57 }
  0x22   : > { %327 = vmatpush.msra.mxu0 %v1946_v46  ;;  %412 = vmatpush.msra.mxu1 %v411_v6  ;;  %v2724_v6 = vand.u32 4294901760, %v2045_v49  ;;  %v453_v57 = vand.u32 4294901760, %v452_v30 }
  0x23   : > { %513 = vmatpush.msra.mxu2 %v1968_v52  ;;  %574 = vmatpush.msra.mxu3 %v1946_v46  ;;  %v754_v52 = vld [vmem:[%s2718_s3 + $0x50] sm:$0xff] }
  0x24   : > { %329 = vmatpush.msra.mxu0 %v1965_v51  ;;  %418 = vmatpush.msra.mxu1 %v417_v31  ;;  %v463_v31 = vand.u32 4294901760, %v2055_v56  ;;  %v458_v53 = vsub.f32 %v2045_v49, %v2724_v6 }
  0x25   : > { %516 = vmatpush.msra.mxu2 %v1984_v59  ;;  %576 = vmatpush.msra.mxu3 %v1965_v51 }
  0x26   : > { %331 = vmatpush.msra.mxu0 %v1981_v58  ;;  %424 = vmatpush.msra.mxu1 %v423_v44  ;;  %v348_v44 = vand.u32 4294901760, %v347_v60  ;;  %v464_v55 = vsub.f32 %v2055_v56, %v463_v31  ;;  %v459_v6 = vand.u32 4294901760, %v458_v53 }
  0x27   : > { %519 = vmatpush.msra.mxu2 %v1999_v1  ;;  %578 = vmatpush.msra.mxu3 %v1981_v58  ;;  %v753_v1 = vld [vmem:[%s2718_s3 + $0x48] sm:$0xff] }
  0x28   : > { %333 = vmatpush.msra.mxu0 %v1995_v63  ;;  %430 = vmatpush.msra.mxu1 %v429_v50  ;;  %v447_v50 = vand.u32 4294901760, %v446_v62  ;;  %v355_v62 = vsub.f32 %v284_v7, %v2076_v45 }
  0x29   : > { %522 = vmatpush.msra.mxu2 %v2016_v18  ;;  %580 = vmatpush.msra.mxu3 %v1995_v63 }
  0x2a   : > { %335 = vmatpush.msra.mxu0 %v2012_v12  ;;  %436 = vmatpush.msra.mxu1 %v435_v61  ;;  %v349_v61 = vsub.f32 %v347_v60, %v348_v44  ;;  %v356_v7 = vand.u32 4294901760, %v355_v62 }
  0x2b   : > { %525 = vmatpush.msra.mxu2 %v2032_v38  ;;  %582 = vmatpush.msra.mxu3 %v2012_v12 }
  0x2c   : > { %337 = vmatpush.msra.mxu0 %v2028_v36  ;;  %442 = vmatpush.msra.mxu1 %v441_v8  ;;  %v465_v8 = vand.u32 4294901760, %v464_v55  ;;  %v350_v30 = vand.u32 4294901760, %v349_v61  ;;  %v357_v14 = vsub.f32 %v355_v62, %v356_v7 }
  0x2d   : > { %343 = vmatmul.f32.vlgmr.msra.gmra.mxu0 %v342_v32  ;;  %528 = vmatpush.msra.mxu2 %v2045_v49  ;;  %v362_v32 = vand.u32 4294901760, %v285_v47 }
  0x2e   : > { %448 = vmatpush.msra.mxu1 %v447_v50  ;;  %613 = vmatpush.msrb.mxu0 %v373_v23  ;;  %v358_v16 = vand.u32 4294901760, %v357_v14  ;;  %v757_v23 = vld [vmem:[%s2718_s3 + $0x68] sm:$0xff] }
  0x2f   : > { %531 = vmatpush.msra.mxu2 %v2055_v56  ;;  %584 = vmatpush.msra.mxu3 %v2028_v36  ;;  %v363_v15 = vsub.f32 %v285_v47, %v362_v32 }
  0x30   : > { %454 = vmatpush.msra.mxu1 %v453_v57  ;;  %617 = vmatpush.msrb.mxu0 %v379_v24 }
  0x31   : > { %534 = vmatmul.f32.vlgmr.msra.gmra.mxu2 %v2019_v29  ;;  %588 = vmatmul.f32.vlgmr.msra.gmra.mxu3 %v340_v39  ;;  %v364_v19 = vand.u32 4294901760, %v363_v15 }
  0x32   : > { %460 = vmatpush.msra.mxu1 %v459_v6  ;;  %621 = vmatpush.msrb.mxu0 %v385_v25  ;;  %v2171_v25 = vsub.f32 %v758_v20, %v2162_v22 }
  0x34   : > { %466 = vmatpush.msra.mxu1 %v465_v8  ;;  %625 = vmatpush.msrb.mxu0 %v391_v26  ;;  %v2174_v26 = vand.u32 4294901760, %v757_v23 }
  0x35   : > { %351 = vmatmul.f32.gmra.mxu0 %v350_v30  ;;  %468 = vmatmul.f32.vlgmr.msra.gmra.mxu1 %v2001_v2 }
  0x36   : > { %692 = vmatpush.msrb.mxu1 %v1835_v3  ;;  %629 = vmatpush.msrb.mxu0 %v397_v33  ;;  %v365_v3 = vsub.f32 %v363_v15, %v364_v19  ;;  %v837_v33 = vand.u32 4294901760, %v2171_v25 }
  0x38   : > { %694 = vmatpush.msrb.mxu1 %v1837_v4  ;;  %633 = vmatpush.msrb.mxu0 %v403_v34  ;;  %v366_v4 = vand.u32 4294901760, %v365_v3  ;;  %v2186_v34 = vsub.f32 %v757_v23, %v2174_v26  ;;  %v838_v42 = vsub.f32 %v2171_v25, %v837_v33 }
  0x39   : > { %539 = vmatmul.f32.gmra.mxu2 %v347_v60  ;;  %594 = vmatmul.f32.gmra.mxu3 %v348_v44  ;;  %v750_v44 = vld [vmem:[%s2718_s3 + $0x30] sm:$0xff] }
  0x3a   : > { %696 = vmatpush.msrb.mxu1 %v1839_v5  ;;  %637 = vmatpush.msrb.mxu0 %v409_v41  ;;  %v2726_v5 = vand.u32 4294901760, %v2016_v18  ;;  %v2232_v18 = vand.u32 4294901760, %v753_v1  ;;  %v2279_v61 = vand.u32 4294901760, %v750_v44 }
  0x3c   : > { %698 = vmatpush.msrb.mxu1 %v1850_v9  ;;  %641 = vmatpush.msrb.mxu0 %v415_v48  ;;  %v2727_v9 = vand.u32 4294901760, %v2032_v38  ;;  %v2242_v39 = vsub.f32 %v753_v1, %v2232_v18  ;;  %v2293_v14 = vsub.f32 %v750_v44, %v2279_v61  ;;  %v745_v1 = vld [vmem:[%s2718_s3 + $0x8] sm:$0xff] }
  0x3d   : > { %359 = vmatmul.f32.gmra.mxu0 %v358_v16  ;;  %472 = vmatmul.f32.gmra.mxu1 %v2037_v43 }
  0x3e   : > { %700 = vmatpush.msrb.mxu1 %v1852_v10  ;;  %645 = vmatpush.msrb.mxu0 %v421_v54  ;;  %v2728_v10 = vand.u32 4294901760, %v2045_v49  ;;  %v839_v54 = vand.u32 4294901760, %v838_v42  ;;  %v751_v49 = vld [vmem:[%s2718_s3 + $0x38] sm:$0xff]  ;;  %v867_v56 = vand.u32 4294901760, %v2242_v39 }
  0x3f   : > { %v2262_v6 = vand.u32 4294901760, %v751_v49 }
  0x40   : > { %702 = vmatpush.msrb.mxu1 %v1854_v11  ;;  %649 = vmatpush.msrb.mxu0 %v427_v0  ;;  %v759_v11 = vld [vmem:[%s2718_s3 + $0x78] sm:$0xff]  ;;  %v868_v50 = vsub.f32 %v2242_v39, %v867_v56 }
  0x41   : > { %544 = vmatmul.f32.gmra.mxu2 %v355_v62  ;;  %600 = vmatmul.f32.gmra.mxu3 %v356_v7  ;;  %v2275_v57 = vsub.f32 %v751_v49, %v2262_v6  ;;  %v749_v62 = vld [vmem:[%s2718_s3 + $0x28] sm:$0xff]  ;;  %v744_v49 = vld [vmem:[%s2718_s3] sm:$0xff] }
  0x42   : > { %704 = vmatpush.msrb.mxu1 %v1873_v17  ;;  %653 = vmatpush.msrb.mxu0 %v433_v13  ;;  %v2154_v17 = vand.u32 4294901760, %v759_v11  ;;  %v869_v8 = vand.u32 4294901760, %v868_v50 }
  0x43   : > { %v879_v7 = vand.u32 4294901760, %v2275_v57 }
  0x44   : > { %706 = vmatpush.msrb.mxu1 %v1884_v21  ;;  %657 = vmatpush.msrb.mxu0 %v439_v37  ;;  %v2160_v21 = vsub.f32 %v759_v11, %v2154_v17 }
  0x45   : > { %367 = vmatmul.f32.gmra.mxu0 %v366_v4  ;;  %476 = vmatmul.f32.gmra.mxu1 %v2076_v45 }
  0x46   : > { %708 = vmatpush.msrb.mxu1 %v1898_v27  ;;  %661 = vmatpush.msrb.mxu0 %v2726_v5  ;;  %v831_v24 = vand.u32 4294901760, %v2160_v21  ;;  %v756_v27 = vld [vmem:[%s2718_s3 + $0x60] sm:$0xff]  ;;  %v885_v5 = vand.u32 4294901760, %v2293_v14 }
  0x47   : > { %765 = vmatpush.msrb.mxu2 %v2154_v17  ;;  %v2189_v35 = vand.u32 4294901760, %v756_v27 }
  0x48   : > { %710 = vmatpush.msrb.mxu1 %v1932_v40  ;;  %665 = vmatpush.msrb.mxu0 %v2727_v9  ;;  %v832_v28 = vsub.f32 %v2160_v21, %v831_v24  ;;  %v755_v40 = vld [vmem:[%s2718_s3 + $0x58] sm:$0xff] }
  0x49   : > { %549 = vmatmul.f32.gmra.mxu2 %v363_v15  ;;  %606 = vmatmul.f32.gmra.mxu3 %v364_v19  ;;  %v2201_v48 = vsub.f32 %v756_v27, %v2189_v35  ;;  %v748_v15 = vld [vmem:[%s2718_s3 + $0x20] sm:$0xff]  ;;  %v880_v19 = vsub.f32 %v2275_v57, %v879_v7  ;;  %v747_v9 = vld [vmem:[%s2718_s3 + $0x18] sm:$0xff]  ;;  %v886_v27 = vsub.f32 %v2293_v14, %v885_v5 }
  0x4a   : > { %712 = vmatpush.msrb.mxu1 %v1946_v46  ;;  %669 = vmatpush.msrb.mxu0 %v2728_v10  ;;  %v833_v41 = vand.u32 4294901760, %v832_v28  ;;  %v843_v46 = vand.u32 4294901760, %v2186_v34  ;;  %v2305_v4 = vand.u32 4294901760, %v748_v15  ;;  %v2318_v23 = vand.u32 4294901760, %v747_v9  ;;  %v746_v28 = vld [vmem:[%s2718_s3 + $0x10] sm:$0xff] }
  0x4b   : > { %767 = vmatpush.msrb.mxu2 %v2162_v22  ;;  %v849_v59 = vand.u32 4294901760, %v2201_v48  ;;  %v881_v10 = vand.u32 4294901760, %v880_v19 }
  0x4c   : > { %714 = vmatpush.msrb.mxu1 %v1965_v51  ;;  %673 = vmatpush.msrb.mxu0 %v463_v31  ;;  %v2205_v51 = vand.u32 4294901760, %v755_v40  ;;  %v2316_v20 = vsub.f32 %v748_v15, %v2305_v4 }
  0x4d   : > { %480 = vmatmul.f32.gmra.mxu1 %v362_v32  ;;  %675 = vmatmul.f32.vlgmr.msrb.gmra.mxu0 %v2001_v2 }
  0x4e   : > { %716 = vmatpush.msrb.mxu1 %v1981_v58  ;;  %944 = vmatpush.msra.mxu0 %v2160_v21  ;;  %v844_v58 = vsub.f32 %v2186_v34, %v843_v46  ;;  %v2219_v0 = vsub.f32 %v755_v40, %v2205_v51  ;;  %v897_v42 = vand.u32 4294901760, %v2316_v20  ;;  %v1767_v21 = vld [vmem:[%s2717_s2] ss:$0 sm:$0xff] }
  0x4f   : > { %769 = vmatpush.msrb.mxu2 %v2174_v26  ;;  %834 = vmatpush.msrb.mxu3 %v833_v41 }
  0x50   : > { %718 = vmatpush.msrb.mxu1 %v1995_v63  ;;  %947 = vmatpush.msra.mxu0 %v2171_v25  ;;  %v2216_v63 = vand.u32 4294901760, %v754_v52  ;;  %v855_v29 = vand.u32 4294901760, %v2219_v0 }
  0x51   : > { %771 = vmatpush.msrb.mxu2 %v2189_v35  ;;  %840 = vmatpush.msrb.mxu3 %v839_v54  ;;  %v2338_v54 = vand.u32 4294901760, %v746_v28 }
  0x52   : > { %720 = vmatpush.msrb.mxu1 %v2012_v12  ;;  %950 = vmatpush.msra.mxu0 %v2186_v34  ;;  %v850_v12 = vsub.f32 %v2201_v48, %v849_v59  ;;  %v2230_v13 = vsub.f32 %v754_v52, %v2216_v63  ;;  %v856_v47 = vsub.f32 %v2219_v0, %v855_v29 }
  0x53   : > { %773 = vmatpush.msrb.mxu2 %v2205_v51  ;;  %v2336_v52 = vsub.f32 %v747_v9, %v2318_v23 }
  0x54   : > { %722 = vmatpush.msrb.mxu1 %v2028_v36  ;;  %953 = vmatpush.msra.mxu0 %v2201_v48  ;;  %v752_v36 = vld [vmem:[%s2718_s3 + $0x40] sm:$0xff]  ;;  %v851_v37 = vand.u32 4294901760, %v850_v12  ;;  %v861_v38 = vand.u32 4294901760, %v2230_v13  ;;  %v857_v31 = vand.u32 4294901760, %v856_v47  ;;  %v898_v12 = vsub.f32 %v2316_v20, %v897_v42 }
  0x55   : > { %679 = vmatmul.f32.gmra.mxu0 %v2037_v43  ;;  %724 = vmatmul.f32.vlgmr.msrb.gmra.mxu1 %v2001_v2  ;;  %v845_v2 = vand.u32 4294901760, %v844_v58  ;;  %v887_v58 = vand.u32 4294901760, %v886_v27  ;;  %v2356_v47 = vand.u32 4294901760, %v745_v1 }
  0x56   : > { %1012 = vmatpush.msra.mxu1 %v2154_v17  ;;  %956 = vmatpush.msra.mxu0 %v2219_v0  ;;  %v862_v55 = vsub.f32 %v2230_v13, %v861_v38 }
  0x57   : > { %846 = vmatpush.msrb.mxu3 %v845_v2  ;;  %775 = vmatpush.msrb.mxu2 %v2216_v63  ;;  %v2370_v50 = vsub.f32 %v745_v1, %v2356_v47 }
  0x58   : > { %1014 = vmatpush.msra.mxu1 %v2162_v22  ;;  %959 = vmatpush.msra.mxu0 %v2230_v13 }
  0x59   : > { %852 = vmatpush.msrb.mxu3 %v851_v37  ;;  %777 = vmatpush.msrb.mxu2 %v2232_v18  ;;  %v2351_v37 = vsub.f32 %v746_v28, %v2338_v54  ;;  %v915_v15 = vand.u32 4294901760, %v2370_v50 }
  0x5a   : > { %1016 = vmatpush.msra.mxu1 %v2174_v26  ;;  %962 = vmatpush.msra.mxu0 %v2242_v39 }
  0x5b   : > { %858 = vmatpush.msrb.mxu3 %v857_v31  ;;  %v909_v44 = vand.u32 4294901760, %v2351_v37  ;;  %v916_v27 = vsub.f32 %v2370_v50, %v915_v15 }
  0x5c   : > { %1018 = vmatpush.msra.mxu1 %v2189_v35 }
  0x5d   : > { %683 = vmatmul.f32.gmra.mxu0 %v2076_v45  ;;  %728 = vmatmul.f32.gmra.mxu1 %v2037_v43  ;;  %v2244_v43 = vand.u32 4294901760, %v752_v36 }
  0x5e   : > { %1020 = vmatpush.msra.mxu1 %v2205_v51 }
  0x5f   : > { %v2260_v60 = vsub.f32 %v752_v36, %v2244_v43  ;;  %779 = vmatpush.msrb.mxu2 %v2244_v43  ;;  %v903_v36 = vand.u32 4294901760, %v2336_v52 }
  0x60   : > { %1022 = vmatpush.msra.mxu1 %v2216_v63 }
  0x61   : > { %v873_v53 = vand.u32 4294901760, %v2260_v60  ;;  %965 = vmatpush.msra.mxu0 %v2260_v60  ;;  %781 = vmatpush.msrb.mxu2 %v2262_v6  ;;  %v904_v31 = vsub.f32 %v2336_v52, %v903_v36 }
  0x62   : > { %1024 = vmatpush.msra.mxu1 %v2232_v18 }
  0x63   : > { %v874_v30 = vsub.f32 %v2260_v60, %v873_v53  ;;  %968 = vmatpush.msra.mxu0 %v2275_v57  ;;  %783 = vmatpush.msrb.mxu2 %v2279_v61 }
  0x64   : > { %1026 = vmatpush.msra.mxu1 %v2244_v43 }
  0x65   : > { %687 = vmatmul.f32.gmra.mxu0 %v362_v32  ;;  %732 = vmatmul.f32.gmra.mxu1 %v2076_v45  ;;  %v863_v45 = vand.u32 4294901760, %v862_v55  ;;  %v875_v16 = vand.u32 4294901760, %v874_v30  ;;  %v899_v55 = vand.u32 4294901760, %v898_v12 }
  0x66   : > { %1028 = vmatpush.msra.mxu1 %v2262_v6  ;;  %971 = vmatpush.msra.mxu0 %v2293_v14 }
  0x67   : > { %864 = vmatpush.msrb.mxu3 %v863_v45  ;;  %v2365_v45 = vand.u32 4294901760, %v744_v49 }
  0x68   : > { %1030 = vmatpush.msra.mxu1 %v2279_v61 }
  0x69   : > { %870 = vmatpush.msrb.mxu3 %v869_v8  ;;  %v910_v8 = vsub.f32 %v2351_v37, %v909_v44  ;;  %v2377_v30 = vsub.f32 %v744_v49, %v2365_v45 }
  0x6b   : > { %876 = vmatpush.msrb.mxu3 %v875_v16  ;;  %v911_v9 = vand.u32 4294901760, %v910_v8 }
  0x6d   : > { %736 = vmatmul.f32.gmra.mxu1 %v362_v32  ;;  %v2288_v32 = vand.u32 4294901760, %v749_v62  ;;  %882 = vmatpush.msrb.mxu3 %v881_v10  ;;  %v921_v10 = vand.u32 4294901760, %v2377_v30 }
  0x6f   : > { %v2303_v3 = vsub.f32 %v749_v62, %v2288_v32  ;;  %1032 = vmatpush.msra.mxu1 %v2288_v32  ;;  %785 = vmatpush.msrb.mxu2 %v2288_v32  ;;  %v905_v62 = vand.u32 4294901760, %v904_v31  ;;  %v922_v28 = vsub.f32 %v2377_v30, %v921_v10 }
  0x70   : > { %888 = vmatpush.msrb.mxu3 %v887_v58 }
  0x71   : > { %v891_v11 = vand.u32 4294901760, %v2303_v3  ;;  %974 = vmatpush.msra.mxu0 %v2303_v3  ;;  %1034 = vmatpush.msra.mxu1 %v2305_v4  ;;  %v923_v58 = vand.u32 4294901760, %v922_v28 }
  0x72   : > { %787 = vmatpush.msrb.mxu2 %v2305_v4 }
  0x73   : > { %v892_v41 = vsub.f32 %v2303_v3, %v891_v11  ;;  %977 = vmatpush.msra.mxu0 %v2316_v20  ;;  %1036 = vmatpush.msra.mxu1 %v2318_v23 }
  0x74   : > { %789 = vmatpush.msrb.mxu2 %v2318_v23 }
  0x75   : > { %v893_v2 = vand.u32 4294901760, %v892_v41  ;;  %980 = vmatpush.msra.mxu0 %v2336_v52  ;;  %1038 = vmatpush.msra.mxu1 %v2338_v54  ;;  %v917_v41 = vand.u32 4294901760, %v916_v27 }
  0x76   : > { %791 = vmatpush.msrb.mxu2 %v2338_v54 }
  0x77   : > { %894 = vmatpush.msrb.mxu3 %v893_v2  ;;  %983 = vmatpush.msra.mxu0 %v2351_v37 }
  0x78   : > { %1040 = vmatpush.msra.mxu1 %v2356_v47  ;;  %793 = vmatpush.msrb.mxu2 %v2356_v47 }
  0x79   : > { %900 = vmatpush.msrb.mxu3 %v899_v55  ;;  %986 = vmatpush.msra.mxu0 %v2370_v50 }
  0x7a   : > { %1042 = vmatpush.msra.mxu1 %v2365_v45  ;;  %795 = vmatpush.msrb.mxu2 %v2365_v45 }
  0x7b   : > { %906 = vmatpush.msrb.mxu3 %v905_v62  ;;  %989 = vmatpush.msra.mxu0 %v2377_v30 }
  0x7c   : > { %1071 = vmatpush.msra.mxu2 %v831_v24 }
  0x7d   : > { %912 = vmatpush.msrb.mxu3 %v911_v9 }
  0x7e   : > { %1075 = vmatpush.msra.mxu2 %v837_v33 }
  0x7f   : > { %918 = vmatpush.msrb.mxu3 %v917_v41 }
  0x80   : > { %1079 = vmatpush.msra.mxu2 %v843_v46 }
  0x81   : > { %924 = vmatpush.msrb.mxu3 %v923_v58 }
  0x82   : > { %1083 = vmatpush.msra.mxu2 %v849_v59 }
  0x83   : > { %1150 = vmatpush.msra.mxu3 %v2154_v17 }
  0x84   : > { %1087 = vmatpush.msra.mxu2 %v855_v29 }
  0x85   : > { %1152 = vmatpush.msra.mxu3 %v2162_v22 }
  0x86   : > { %1091 = vmatpush.msra.mxu2 %v861_v38 }
  0x87   : > { %1154 = vmatpush.msra.mxu3 %v2174_v26 }
  0x88   : > { %1095 = vmatpush.msra.mxu2 %v867_v56 }
  0x89   : > { %1156 = vmatpush.msra.mxu3 %v2189_v35 }
  0x8a   : > { %1099 = vmatpush.msra.mxu2 %v873_v53 }
  0x8b   : > { %1158 = vmatpush.msra.mxu3 %v2205_v51 }
  0x8c   : > { %1103 = vmatpush.msra.mxu2 %v879_v7 }
  0x8d   : > { %1160 = vmatpush.msra.mxu3 %v2216_v63 }
  0x8e   : > { %1107 = vmatpush.msra.mxu2 %v885_v5 }
  0x8f   : > { %1162 = vmatpush.msra.mxu3 %v2232_v18 }
  0x90   : > { %1111 = vmatpush.msra.mxu2 %v891_v11 }
  0x91   : > { %1164 = vmatpush.msra.mxu3 %v2244_v43 }
  0x92   : > { %1115 = vmatpush.msra.mxu2 %v897_v42 }
  0x93   : > { %1166 = vmatpush.msra.mxu3 %v2262_v6 }
  0x94   : > { %1119 = vmatpush.msra.mxu2 %v903_v36 }
  0x95   : > { %1168 = vmatpush.msra.mxu3 %v2279_v61 }
  0x96   : > { %1123 = vmatpush.msra.mxu2 %v909_v44 }
  0x97   : > { %1170 = vmatpush.msra.mxu3 %v2288_v32 }
  0x98   : > { %1127 = vmatpush.msra.mxu2 %v915_v15 }
  0x99   : > { %1172 = vmatpush.msra.mxu3 %v2305_v4 }
  0x9a   : > { %1131 = vmatpush.msra.mxu2 %v921_v10 }
  0x9b   : > { %1174 = vmatpush.msra.mxu3 %v2318_v23 }
  0x9d   : > { %1176 = vmatpush.msra.mxu3 %v2338_v54 }
  0x9f   : > { %1178 = vmatpush.msra.mxu3 %v2356_v47 }
  0xa1   : > { %1180 = vmatpush.msra.mxu3 %v2365_v45 }
  0xaa   : > { %v2329_v40 = vpop.f32.mrf.mxu0 }
  0xab   : > { %v345_v25 = vadd.f32 %v1767_v21, %v2329_v40 }
  0xb2   : > { %v352_v16 = vpop.f32.mrf.mxu0  ;;  %v469_v19 = vpop.f32.mrf.mxu1 }
  0xb3   : > { %v470_v33 = vadd.f32 %v469_v19, %v345_v25  ;;  %v353_v46 = vadd.f32 %v1767_v21, %v352_v16  ;;  %v1217_v25 = vld [vmem:[%s2720_s5 + $0x78] sm:$0xff] }
  0xb4   : > { %v535_v17 = vpop.f32.mrf.mxu2  ;;  %v589_v26 = vpop.f32.mrf.mxu3 }
  0xb5   : > { %v536_v48 = vadd.f32 %v535_v17, %v470_v33  ;;  %v1216_v33 = vld [vmem:[%s2720_s5 + $0x70] sm:$0xff] }
  0xb7   : > { %v590_v59 = vadd.f32 %v589_v26, %v536_v48  ;;  %v2440_v26 = vand.u32 4294901760, %v1217_v25 }
  0xb9   : > { %1223 = vmatpush.msrb.mxu0 %v2440_v26 }
  0xba   : > { %v360_v1 = vpop.f32.mrf.mxu0  ;;  %v473_v2 = vpop.f32.mrf.mxu1 }
  0xbb   : > { %v474_v63 = vadd.f32 %v473_v2, %v353_v46  ;;  %v361_v38 = vadd.f32 %v1767_v21, %v360_v1  ;;  %v1215_v46 = vld [vmem:[%s2720_s5 + $0x68] sm:$0xff] }
  0xbc   : > { %v540_v51 = vpop.f32.mrf.mxu2  ;;  %v595_v0 = vpop.f32.mrf.mxu3 }
  0xbd   : > { %v541_v39 = vadd.f32 %v540_v51, %v474_v63  ;;  %v1214_v63 = vld [vmem:[%s2720_s5 + $0x60] sm:$0xff] }
  0xbf   : > { %v596_v6 = vadd.f32 %v595_v0, %v541_v39 }
  0xc2   : > { %v368_v24 = vpop.f32.mrf.mxu0  ;;  %v477_v22 = vpop.f32.mrf.mxu1 }
  0xc3   : > { %v478_v53 = vadd.f32 %v477_v22, %v361_v38  ;;  %v369_v3 = vadd.f32 %v1767_v21, %v368_v24  ;;  %v1213_v38 = vld [vmem:[%s2720_s5 + $0x58] sm:$0xff] }
  0xc4   : > { %v545_v60 = vpop.f32.mrf.mxu2  ;;  %v601_v32 = vpop.f32.mrf.mxu3 }
  0xc5   : > { %v546_v4 = vadd.f32 %v545_v60, %v478_v53  ;;  %v1212_v53 = vld [vmem:[%s2720_s5 + $0x50] sm:$0xff] }
  0xc7   : > { %v602_v42 = vadd.f32 %v601_v32, %v546_v4  ;;  %v2488_v32 = vand.u32 4294901760, %v1212_v53 }
  0xca   : > { %v481_v34 = vpop.f32.mrf.mxu1  ;;  %v676_v35 = vpop.f32.mrf.mxu0 }
  0xcb   : > { %v677_v13 = vadd.f32 %v676_v35, %v590_v59  ;;  %v482_v52 = vadd.f32 %v481_v34, %v369_v3  ;;  %v1288_v34 = vsub.f32 %v1217_v25, %v2440_v26  ;;  %v2446_v35 = vand.u32 4294901760, %v1216_v33  ;;  %v1211_v3 = vld [vmem:[%s2720_s5 + $0x48] sm:$0xff] }
  0xcc   : > { %v550_v36 = vpop.f32.mrf.mxu2  ;;  %v607_v45 = vpop.f32.mrf.mxu3  ;;  %v2456_v59 = vand.u32 4294901760, %v1215_v46 }
  0xcd   : > { %v551_v55 = vadd.f32 %v550_v36, %v482_v52  ;;  %v2453_v48 = vand.u32 4294901760, %v1288_v34  ;;  %v1294_v51 = vsub.f32 %v1216_v33, %v2446_v35  ;;  %1225 = vmatpush.msrb.mxu0 %v2446_v35 }
  0xcf   : > { %v608_v30 = vadd.f32 %v607_v45, %v551_v55  ;;  %v1290_v0 = vsub.f32 %v1288_v34, %v2453_v48  ;;  %1227 = vmatpush.msrb.mxu0 %v2456_v59  ;;  %v1208_v45 = vld [vmem:[%s2720_s5 + $0x30] sm:$0xff] }
  0xd1   : > { %v1291_v39 = vand.u32 4294901760, %v1290_v0 }
  0xd2   : > { %v680_v18 = vpop.f32.mrf.mxu0  ;;  %v725_v29 = vpop.f32.mrf.mxu1 }
  0xd3   : > { %v726_v43 = vadd.f32 %v725_v29, %v677_v13  ;;  %v681_v61 = vadd.f32 %v680_v18, %v596_v6  ;;  %v2464_v13 = vand.u32 4294901760, %v1294_v51  ;;  %v1300_v18 = vsub.f32 %v1215_v46, %v2456_v59  ;;  %1292 = vmatpush.msrb.mxu1 %v1291_v39 }
  0xd4   : > { %v2467_v29 = vand.u32 4294901760, %v1214_v63  ;;  %v2479_v6 = vand.u32 4294901760, %v1213_v38 }
  0xd5   : > { %v740_v56 = vmax.f32 %v726_v43, 0.0  ;;  %v1296_v43 = vsub.f32 %v1294_v51, %v2464_v13 }
  0xd6   : > { %v1306_v60 = vsub.f32 %v1214_v63, %v2467_v29  ;;  %1229 = vmatpush.msrb.mxu0 %v2467_v29  ;;  %v1204_v63 = vld [vmem:[%s2720_s5 + $0x10] sm:$0xff] }
  0xd7   : > { %v796_v57 = vand.u32 4294901760, %v740_v56  ;;  %v2577_v39 = vand.u32 4294901760, %v1204_v63 }
  0xd8   : > { %1231 = vmatpush.msrb.mxu0 %v2479_v6 }
  0xd9   : > { %v797_v7 = vsub.f32 %v740_v56, %v796_v57  ;;  %926 = vmatmul.f32.vlgmr.msrb.gmra.mxu3 %v796_v57  ;;  %v2475_v56 = vand.u32 4294901760, %v1300_v18 }
  0xda   : > { %v729_v14 = vpop.f32.mrf.mxu1  ;;  %v684_v20 = vpop.f32.mrf.mxu0  ;;  %1470 = vmatpush.msrb.mxu3 %v2440_v26  ;;  %1233 = vmatpush.msrb.mxu0 %v2488_v32 }
  0xdb   : > { %v730_v5 = vadd.f32 %v729_v14, %v681_v61  ;;  %992 = vmatmul.f32.vlgmr.msra.gmra.mxu0 %v797_v7  ;;  %v798_v11 = vand.u32 4294901760, %v797_v7  ;;  %v685_v37 = vadd.f32 %v684_v20, %v602_v42  ;;  %v1302_v61 = vsub.f32 %v1300_v18, %v2475_v56 }
  0xdc   : > { %1472 = vmatpush.msrb.mxu3 %v2446_v35  ;;  %v1312_v14 = vsub.f32 %v1213_v38, %v2479_v6  ;;  %v2498_v20 = vand.u32 4294901760, %v1211_v3 }
  0xdd   : > { %v741_v23 = vmax.f32 %v730_v5, 0.0  ;;  %1046 = vmatmul.f32.vlgmr.msra.gmra.mxu1 %v798_v11  ;;  %v799_v40 = vsub.f32 %v797_v7, %v798_v11  ;;  %v2486_v7 = vand.u32 4294901760, %v1306_v60  ;;  %v1303_v4 = vand.u32 4294901760, %v1302_v61 }
  0xde   : > { %1474 = vmatpush.msrb.mxu3 %v2456_v59  ;;  %v1318_v11 = vsub.f32 %v1212_v53, %v2488_v32  ;;  %1235 = vmatpush.msrb.mxu0 %v2498_v20 }
  0xdf   : > { %v804_v54 = vand.u32 4294901760, %v741_v23  ;;  %v800_v12 = vand.u32 4294901760, %v799_v40  ;;  %v1308_v5 = vsub.f32 %v1306_v60, %v2486_v7  ;;  %v1210_v40 = vld [vmem:[%s2720_s5 + $0x40] sm:$0xff] }
  0xe0   : > { %1476 = vmatpush.msrb.mxu3 %v2467_v29  ;;  %v2506_v52 = vand.u32 4294901760, %v1318_v11 }
  0xe1   : > { %v805_v47 = vsub.f32 %v741_v23, %v804_v54  ;;  %801 = vmatmul.f32.vlgmr.msrb.gmra.mxu2 %v800_v12  ;;  %930 = vmatmul.f32.gmra.mxu3 %v804_v54  ;;  %v2500_v23 = vand.u32 4294901760, %v1312_v14  ;;  %v1309_v42 = vand.u32 4294901760, %v1308_v5  ;;  %v2509_v12 = vand.u32 4294901760, %v1210_v40 }
  0xe2   : > { %v733_v49 = vpop.f32.mrf.mxu1  ;;  %v688_v8 = vpop.f32.mrf.mxu0  ;;  %1402 = vmatpush.msrb.mxu2 %v1288_v34  ;;  %1478 = vmatpush.msrb.mxu3 %v2479_v6 }
  0xe3   : > { %v734_v31 = vadd.f32 %v733_v49, %v685_v37  ;;  %997 = vmatmul.f32.gmra.mxu0 %v805_v47  ;;  %v806_v44 = vand.u32 4294901760, %v805_v47  ;;  %v689_v19 = vadd.f32 %v688_v8, %v608_v30  ;;  %v1314_v36 = vsub.f32 %v1312_v14, %v2500_v23  ;;  %v1209_v37 = vld [vmem:[%s2720_s5 + $0x38] sm:$0xff] }
  0xe4   : > { %1405 = vmatpush.msrb.mxu2 %v1294_v51  ;;  %1480 = vmatpush.msrb.mxu3 %v2488_v32  ;;  %v1330_v55 = vsub.f32 %v1210_v40, %v2509_v12 }
  0xe5   : > { %v742_v50 = vmax.f32 %v734_v31, 0.0  ;;  %1052 = vmatmul.f32.gmra.mxu1 %v806_v44  ;;  %v807_v62 = vsub.f32 %v805_v47, %v806_v44  ;;  %v1320_v47 = vsub.f32 %v1318_v11, %v2506_v52  ;;  %v2521_v31 = vand.u32 4294901760, %v1209_v37  ;;  %1237 = vmatpush.msrb.mxu0 %v2509_v12 }
  0xe6   : > { %1408 = vmatpush.msrb.mxu2 %v1300_v18  ;;  %1482 = vmatpush.msrb.mxu3 %v2498_v20  ;;  %v1315_v44 = vand.u32 4294901760, %v1314_v36  ;;  %v2529_v8 = vand.u32 4294901760, %v1330_v55 }
  0xe7   : > { %v812_v15 = vand.u32 4294901760, %v742_v50  ;;  %v808_v16 = vand.u32 4294901760, %v807_v62  ;;  %v1336_v30 = vsub.f32 %v1209_v37, %v2521_v31  ;;  %1239 = vmatpush.msrb.mxu0 %v2521_v31 }
  0xe8   : > { %1411 = vmatpush.msrb.mxu2 %v1306_v60  ;;  %1484 = vmatpush.msrb.mxu3 %v2509_v12  ;;  %v1203_v60 = vld [vmem:[%s2720_s5 + $0x8] sm:$0xff] }
  0xe9   : > { %v813_v9 = vsub.f32 %v742_v50, %v812_v15  ;;  %809 = vmatmul.f32.gmra.mxu2 %v808_v16  ;;  %934 = vmatmul.f32.gmra.mxu3 %v812_v15  ;;  %v1321_v50 = vand.u32 4294901760, %v1320_v47  ;;  %v1207_v16 = vld [vmem:[%s2720_s5 + $0x28] sm:$0xff] }
  0xea   : > { %v737_v10 = vpop.f32.mrf.mxu1  ;;  %1414 = vmatpush.msrb.mxu2 %v1312_v14  ;;  %1486 = vmatpush.msrb.mxu3 %v2521_v31  ;;  %v1366_v14 = vsub.f32 %v1204_v63, %v2577_v39 }
  0xeb   : > { %v738_v27 = vadd.f32 %v737_v10, %v689_v19  ;;  %1002 = vmatmul.f32.gmra.mxu0 %v813_v9  ;;  %v814_v28 = vand.u32 4294901760, %v813_v9  ;;  %v2539_v10 = vand.u32 4294901760, %v1336_v30 }
  0xec   : > { %1417 = vmatpush.msrb.mxu2 %v1318_v11  ;;  %v2596_v40 = vand.u32 4294901760, %v1366_v14 }
  0xed   : > { %v743_v41 = vmax.f32 %v738_v27, 0.0  ;;  %1058 = vmatmul.f32.gmra.mxu1 %v814_v28  ;;  %v815_v58 = vsub.f32 %v813_v9, %v814_v28  ;;  %v1332_v9 = vsub.f32 %v1330_v55, %v2529_v8  ;;  %v2541_v27 = vand.u32 4294901760, %v1207_v16 }
  0xef   : > { %v820_v1 = vand.u32 4294901760, %v743_v41  ;;  %v816_v2 = vand.u32 4294901760, %v815_v58  ;;  %v1333_v58 = vand.u32 4294901760, %v1332_v9 }
  0xf1   : > { %v821_v21 = vsub.f32 %v743_v41, %v820_v1  ;;  %817 = vmatmul.f32.gmra.mxu2 %v816_v2  ;;  %938 = vmatmul.f32.gmra.mxu3 %v820_v1  ;;  %v1206_v41 = vld [vmem:[%s2720_s5 + $0x20] sm:$0xff]  ;;  %v1348_v2 = vsub.f32 %v1207_v16, %v2541_v27 }
  0xf3   : > { %1007 = vmatmul.f32.gmra.mxu0 %v821_v21  ;;  %v822_v17 = vand.u32 4294901760, %v821_v21  ;;  %v2562_v33 = vand.u32 4294901760, %v1348_v2 }
  0xf5   : > { %1064 = vmatmul.f32.gmra.mxu1 %v822_v17  ;;  %v823_v24 = vsub.f32 %v821_v21, %v822_v17  ;;  %v2551_v21 = vand.u32 4294901760, %v1206_v41  ;;  %v1350_v0 = vsub.f32 %v1348_v2, %v2562_v33 }
  0xf7   : > { %v824_v22 = vand.u32 4294901760, %v823_v24  ;;  %v1205_v24 = vld [vmem:[%s2720_s5 + $0x18] sm:$0xff]  ;;  %v1354_v34 = vsub.f32 %v1206_v41, %v2551_v21  ;;  %v1351_v53 = vand.u32 4294901760, %v1350_v0 }
  0xf8   : > { %v2565_v46 = vand.u32 4294901760, %v1205_v24 }
  0xf9   : > { %825 = vmatmul.f32.gmra.mxu2 %v824_v22  ;;  %1182 = vmatmul.f32.vlgmr.msra.gmra.mxu3 %v796_v57  ;;  %v2574_v18 = vand.u32 4294901760, %v1354_v34 }
  0xfa   : > { %v1360_v38 = vsub.f32 %v1205_v24, %v2565_v46 }
  0xfc   : > { %v2585_v61 = vand.u32 4294901760, %v1360_v38 }
  0xfe   : > { %v1362_v11 = vsub.f32 %v1360_v38, %v2585_v61 }
 0x100   : > { %v1363_v47 = vand.u32 4294901760, %v1362_v11 }
 0x101   : > { %1133 = vmatmul.f32.vlgmr.msra.gmra.mxu2 %v796_v57  ;;  %1186 = vmatmul.f32.gmra.mxu3 %v804_v54  ;;  %v1297_v57 = vand.u32 4294901760, %v1296_v43 }
 0x103   : > { %1298 = vmatpush.msrb.mxu1 %v1297_v57  ;;  %v1356_v57 = vsub.f32 %v1354_v34, %v2574_v18 }
 0x105   : > { %1304 = vmatpush.msrb.mxu1 %v1303_v4  ;;  %v1202_v4 = vld [vmem:[%s2720_s5] sm:$0xff]  ;;  %v1357_v5 = vand.u32 4294901760, %v1356_v57 }
 0x107   : > { %1310 = vmatpush.msrb.mxu1 %v1309_v42  ;;  %v2598_v42 = vand.u32 4294901760, %v1202_v4 }
 0x109   : > { %1137 = vmatmul.f32.gmra.mxu2 %v804_v54  ;;  %1190 = vmatmul.f32.gmra.mxu3 %v812_v15  ;;  %v1324_v54 = vsub.f32 %v1211_v3, %v2498_v20  ;;  %v2590_v3 = vand.u32 4294901760, %v1203_v60 }
 0x10a   : > { %1316 = vmatpush.msrb.mxu1 %v1315_v44  ;;  %v1378_v44 = vsub.f32 %v1202_v4, %v2598_v42 }
 0x10b   : > { %v2518_v49 = vand.u32 4294901760, %v1324_v54  ;;  %1420 = vmatpush.msrb.mxu2 %v1324_v54 }
 0x10c   : > { %1322 = vmatpush.msrb.mxu1 %v1321_v50 }
 0x10d   : > { %v1326_v62 = vsub.f32 %v1324_v54, %v2518_v49  ;;  %1423 = vmatpush.msrb.mxu2 %v1330_v55  ;;  %v1372_v54 = vsub.f32 %v1203_v60, %v2590_v3  ;;  %v1368_v55 = vsub.f32 %v1366_v14, %v2596_v40 }
 0x10f   : > { %v1327_v19 = vand.u32 4294901760, %v1326_v62  ;;  %1426 = vmatpush.msrb.mxu2 %v1336_v30  ;;  %v1369_v50 = vand.u32 4294901760, %v1368_v55  ;;  %v2611_v62 = vand.u32 4294901760, %v1378_v44 }
 0x111   : > { %1141 = vmatmul.f32.gmra.mxu2 %v812_v15  ;;  %1194 = vmatmul.f32.gmra.mxu3 %v820_v1  ;;  %v2533_v15 = vand.u32 4294901760, %v1208_v45  ;;  %v1380_v16 = vsub.f32 %v1378_v44, %v2611_v62 }
 0x112   : > { %1328 = vmatpush.msrb.mxu1 %v1327_v19 }
 0x113   : > { %v1342_v28 = vsub.f32 %v1208_v45, %v2533_v15  ;;  %1488 = vmatpush.msrb.mxu3 %v2533_v15  ;;  %1241 = vmatpush.msrb.mxu0 %v2533_v15  ;;  %v2609_v45 = vand.u32 4294901760, %v1372_v54  ;;  %v1381_v9 = vand.u32 4294901760, %v1380_v16 }
 0x114   : > { %1334 = vmatpush.msrb.mxu1 %v1333_v58 }
 0x115   : > { %v2555_v17 = vand.u32 4294901760, %v1342_v28  ;;  %1429 = vmatpush.msrb.mxu2 %v1342_v28  ;;  %1490 = vmatpush.msrb.mxu3 %v2541_v27 }
 0x116   : > { %1243 = vmatpush.msrb.mxu0 %v2541_v27 }
 0x117   : > { %v1344_v51 = vsub.f32 %v1342_v28, %v2555_v17  ;;  %1432 = vmatpush.msrb.mxu2 %v1348_v2  ;;  %1492 = vmatpush.msrb.mxu3 %v2551_v21 }
 0x118   : > { %1245 = vmatpush.msrb.mxu0 %v2551_v21 }
 0x119   : > { %1145 = vmatmul.f32.gmra.mxu2 %v820_v1  ;;  %v1338_v1 = vsub.f32 %v1336_v30, %v2539_v10  ;;  %v1345_v43 = vand.u32 4294901760, %v1344_v51  ;;  %1494 = vmatpush.msrb.mxu3 %v2565_v46  ;;  %v1374_v30 = vsub.f32 %v1372_v54, %v2609_v45 }
 0x11a   : > { %1435 = vmatpush.msrb.mxu2 %v1354_v34  ;;  %1247 = vmatpush.msrb.mxu0 %v2565_v46 }
 0x11b   : > { %v1339_v25 = vand.u32 4294901760, %v1338_v1  ;;  %1496 = vmatpush.msrb.mxu3 %v2577_v39  ;;  %v1375_v19 = vand.u32 4294901760, %v1374_v30 }
 0x11c   : > { %1438 = vmatpush.msrb.mxu2 %v1360_v38  ;;  %1249 = vmatpush.msrb.mxu0 %v2577_v39 }
 0x11d   : > { %1340 = vmatpush.msrb.mxu1 %v1339_v25  ;;  %1498 = vmatpush.msrb.mxu3 %v2590_v3 }
 0x11e   : > { %1441 = vmatpush.msrb.mxu2 %v1366_v14  ;;  %1251 = vmatpush.msrb.mxu0 %v2590_v3 }
 0x11f   : > { %1346 = vmatpush.msrb.mxu1 %v1345_v43  ;;  %1500 = vmatpush.msrb.mxu3 %v2598_v42 }
 0x120   : > { %1444 = vmatpush.msrb.mxu2 %v1372_v54  ;;  %1253 = vmatpush.msrb.mxu0 %v2598_v42 }
 0x121   : > { %1352 = vmatpush.msrb.mxu1 %v1351_v53  ;;  %1743 = vmatpush.msra.mxu3 %v2440_v26 }
 0x122   : > { %1447 = vmatpush.msrb.mxu2 %v1378_v44  ;;  %1529 = vmatpush.msra.mxu0 %v2453_v48 }
 0x123   : > { %1358 = vmatpush.msrb.mxu1 %v1357_v5  ;;  %1744 = vmatpush.msra.mxu3 %v2446_v35 }
 0x124   : > { %1727 = vmatpush.msra.mxu2 %v2453_v48  ;;  %1533 = vmatpush.msra.mxu0 %v2464_v13 }
 0x125   : > { %1364 = vmatpush.msrb.mxu1 %v1363_v47  ;;  %1745 = vmatpush.msra.mxu3 %v2456_v59 }
 0x126   : > { %1728 = vmatpush.msra.mxu2 %v2464_v13  ;;  %1537 = vmatpush.msra.mxu0 %v2475_v56 }
 0x127   : > { %1370 = vmatpush.msrb.mxu1 %v1369_v50  ;;  %1746 = vmatpush.msra.mxu3 %v2467_v29 }
 0x128   : > { %1729 = vmatpush.msra.mxu2 %v2475_v56  ;;  %1541 = vmatpush.msra.mxu0 %v2486_v7 }
 0x129   : > { %1376 = vmatpush.msrb.mxu1 %v1375_v19  ;;  %1747 = vmatpush.msra.mxu3 %v2479_v6 }
 0x12a   : > { %1730 = vmatpush.msra.mxu2 %v2486_v7  ;;  %1545 = vmatpush.msra.mxu0 %v2500_v23 }
 0x12b   : > { %1382 = vmatpush.msrb.mxu1 %v1381_v9  ;;  %1748 = vmatpush.msra.mxu3 %v2488_v32 }
 0x12c   : > { %1731 = vmatpush.msra.mxu2 %v2500_v23  ;;  %1549 = vmatpush.msra.mxu0 %v2506_v52 }
 0x12d   : > { %1608 = vmatpush.msra.mxu1 %v2440_v26  ;;  %v2641_v26 = vld [vmem:[%s2719_s4] ss:$0 sm:$0xff]  ;;  %1749 = vmatpush.msra.mxu3 %v2498_v20 }
 0x12e   : > { %1732 = vmatpush.msra.mxu2 %v2506_v52  ;;  %1553 = vmatpush.msra.mxu0 %v2518_v49 }
 0x12f   : > { %1610 = vmatpush.msra.mxu1 %v2446_v35  ;;  %1750 = vmatpush.msra.mxu3 %v2509_v12 }
 0x130   : > { %1733 = vmatpush.msra.mxu2 %v2518_v49  ;;  %1557 = vmatpush.msra.mxu0 %v2529_v8 }
 0x131   : > { %1612 = vmatpush.msra.mxu1 %v2456_v59  ;;  %1751 = vmatpush.msra.mxu3 %v2521_v31 }
 0x132   : > { %1734 = vmatpush.msra.mxu2 %v2529_v8  ;;  %1561 = vmatpush.msra.mxu0 %v2539_v10 }
 0x133   : > { %1614 = vmatpush.msra.mxu1 %v2467_v29  ;;  %1752 = vmatpush.msra.mxu3 %v2533_v15 }
 0x134   : > { %1735 = vmatpush.msra.mxu2 %v2539_v10  ;;  %1565 = vmatpush.msra.mxu0 %v2555_v17 }
 0x135   : > { %1616 = vmatpush.msra.mxu1 %v2479_v6  ;;  %1753 = vmatpush.msra.mxu3 %v2541_v27 }
 0x136   : > { %1736 = vmatpush.msra.mxu2 %v2555_v17  ;;  %1569 = vmatpush.msra.mxu0 %v2562_v33 }
 0x137   : > { %1618 = vmatpush.msra.mxu1 %v2488_v32  ;;  %1754 = vmatpush.msra.mxu3 %v2551_v21 }
 0x138   : > { %1737 = vmatpush.msra.mxu2 %v2562_v33  ;;  %1573 = vmatpush.msra.mxu0 %v2574_v18 }
 0x139   : > { %1620 = vmatpush.msra.mxu1 %v2498_v20  ;;  %1755 = vmatpush.msra.mxu3 %v2565_v46 }
 0x13a   : > { %1738 = vmatpush.msra.mxu2 %v2574_v18  ;;  %1577 = vmatpush.msra.mxu0 %v2585_v61 }
 0x13b   : > { %1622 = vmatpush.msra.mxu1 %v2509_v12  ;;  %1756 = vmatpush.msra.mxu3 %v2577_v39 }
 0x13c   : > { %1739 = vmatpush.msra.mxu2 %v2585_v61  ;;  %1581 = vmatpush.msra.mxu0 %v2596_v40 }
 0x13d   : > { %1624 = vmatpush.msra.mxu1 %v2521_v31  ;;  %1757 = vmatpush.msra.mxu3 %v2590_v3 }
 0x13e   : > { %1740 = vmatpush.msra.mxu2 %v2596_v40  ;;  %1585 = vmatpush.msra.mxu0 %v2609_v45 }
 0x13f   : > { %1626 = vmatpush.msra.mxu1 %v2533_v15  ;;  %1758 = vmatpush.msra.mxu3 %v2598_v42 }
 0x140   : > { %1741 = vmatpush.msra.mxu2 %v2609_v45  ;;  %1589 = vmatpush.msra.mxu0 %v2611_v62 }
 0x141   : > { %1628 = vmatpush.msra.mxu1 %v2541_v27 }
 0x142   : > { %1742 = vmatpush.msra.mxu2 %v2611_v62 }
 0x143   : > { %1630 = vmatpush.msra.mxu1 %v2551_v21 }
 0x145   : > { %1632 = vmatpush.msra.mxu1 %v2565_v46 }
 0x147   : > { %1634 = vmatpush.msra.mxu1 %v2577_v39 }
 0x149   : > { %1636 = vmatpush.msra.mxu1 %v2590_v3 }
 0x14b   : > { %1638 = vmatpush.msra.mxu1 %v2598_v42 }
 0x158   : > { %v993_v13 = vpop.f32.mrf.mxu0 }
 0x15a   : > { %v1047_v56 = vpop.f32.mrf.mxu1 }
 0x15c   : > { %v2560_v22 = vpop.f32.mrf.mxu3 }
 0x160   : > { %v998_v23 = vpop.f32.mrf.mxu0 }
 0x162   : > { %v1053_v8 = vpop.f32.mrf.mxu1 }
 0x164   : > { %v802_v36 = vpop.f32.mrf.mxu2  ;;  %v2603_v37 = vpop.f32.mrf.mxu3 }
 0x165   : > { %v803_v59 = vadd.f32 %v2641_v26, %v802_v36 }
 0x167   : > { %v928_v29 = vadd.f32 %v2560_v22, %v803_v59 }
 0x168   : > { %v1003_v24 = vpop.f32.mrf.mxu0 }
 0x169   : > { %v994_v32 = vadd.f32 %v993_v13, %v928_v29 }
 0x16a   : > { %v1059_v0 = vpop.f32.mrf.mxu1 }
 0x16b   : > { %v1048_v12 = vadd.f32 %v1047_v56, %v994_v32 }
 0x16c   : > { %v810_v28 = vpop.f32.mrf.mxu2  ;;  %v2623_v41 = vpop.f32.mrf.mxu3 }
 0x16d   : > { %v811_v7 = vadd.f32 %v2641_v26, %v810_v28 }
 0x16f   : > { %v932_v52 = vadd.f32 %v2603_v37, %v811_v7 }
 0x170   : > { %v1008_v4 = vpop.f32.mrf.mxu0 }
 0x171   : > { %v999_v27 = vadd.f32 %v998_v23, %v932_v52 }
 0x172   : > { %v1065_v36 = vpop.f32.mrf.mxu1 }
 0x173   : > { %v1054_v17 = vadd.f32 %v1053_v8, %v999_v27 }
 0x174   : > { %v818_v35 = vpop.f32.mrf.mxu2  ;;  %v2649_v48 = vpop.f32.mrf.mxu3 }
 0x175   : > { %v819_v15 = vadd.f32 %v2641_v26, %v818_v35 }
 0x177   : > { %v936_v2 = vadd.f32 %v2623_v41, %v819_v15 }
 0x179   : > { %v1004_v63 = vadd.f32 %v1003_v24, %v936_v2 }
 0x17b   : > { %v1060_v60 = vadd.f32 %v1059_v0, %v1004_v63 }
 0x17c   : > { %v826_v6 = vpop.f32.mrf.mxu2  ;;  %v1183_v20 = vpop.f32.mrf.mxu3 }
 0x17d   : > { %v827_v34 = vadd.f32 %v2641_v26, %v826_v6 }
 0x17f   : > { %v940_v39 = vadd.f32 %v2649_v48, %v827_v34 }
 0x181   : > { %v1009_v40 = vadd.f32 %v1008_v4, %v940_v39 }
 0x183   : > { %v1066_v47 = vadd.f32 %v1065_v36, %v1009_v40 }
 0x184   : > { %v1134_v49 = vpop.f32.mrf.mxu2  ;;  %v1187_v1 = vpop.f32.mrf.mxu3 }
 0x185   : > { %v1135_v31 = vadd.f32 %v1134_v49, %v1048_v12  ;;  %v1769_v12 = vld [vmem:[%s2721_s6] ss:$0 sm:$0xff] }
 0x187   : > { %v1184_v10 = vadd.f32 %v1183_v20, %v1135_v31 }
 0x189   : > { %v1198_v58 = vmax.f32 %v1184_v10, 0.0 }
 0x18b   : > { %v2695_v21 = vand.u32 4294901760, %v1198_v58 }
 0x18c   : > { %v1138_v22 = vpop.f32.mrf.mxu2  ;;  %v1191_v57 = vpop.f32.mrf.mxu3 }
 0x18d   : > { %v1255_v25 = vsub.f32 %v1198_v58, %v2695_v21  ;;  %v1139_v33 = vadd.f32 %v1138_v22, %v1054_v17  ;;  %1384 = vmatmul.f32.vlgmr.msrb.gmra.mxu1 %v2695_v21 }
 0x18f   : > { %v1188_v46 = vadd.f32 %v1187_v1, %v1139_v33  ;;  %1450 = vmatmul.f32.vlgmr.msrb.gmra.mxu2 %v1255_v25  ;;  %v1256_v51 = vand.u32 4294901760, %v1255_v25 }
 0x191   : > { %v1199_v18 = vmax.f32 %v1188_v46, 0.0  ;;  %1504 = vmatmul.f32.vlgmr.msrb.gmra.mxu3 %v1256_v51  ;;  %v1257_v38 = vsub.f32 %v1255_v25, %v1256_v51 }
 0x193   : > { %v1262_v43 = vand.u32 4294901760, %v1199_v18  ;;  %v1258_v53 = vand.u32 4294901760, %v1257_v38 }
 0x194   : > { %v1142_v61 = vpop.f32.mrf.mxu2  ;;  %v1195_v62 = vpop.f32.mrf.mxu3 }
 0x195   : > { %v1143_v14 = vadd.f32 %v1142_v61, %v1060_v60  ;;  %1259 = vmatmul.f32.vlgmr.msrb.gmra.mxu0 %v1258_v53  ;;  %1388 = vmatmul.f32.gmra.mxu1 %v1262_v43  ;;  %v1263_v3 = vsub.f32 %v1199_v18, %v1262_v43 }
 0x197   : > { %v1192_v5 = vadd.f32 %v1191_v57, %v1143_v14  ;;  %1455 = vmatmul.f32.gmra.mxu2 %v1263_v3  ;;  %v1264_v11 = vand.u32 4294901760, %v1263_v3 }
 0x199   : > { %v1200_v42 = vmax.f32 %v1192_v5, 0.0  ;;  %1510 = vmatmul.f32.gmra.mxu3 %v1264_v11  ;;  %v1265_v54 = vsub.f32 %v1263_v3, %v1264_v11 }
 0x19b   : > { %v1270_v37 = vand.u32 4294901760, %v1200_v42  ;;  %v1266_v55 = vand.u32 4294901760, %v1265_v54 }
 0x19c   : > { %v1146_v44 = vpop.f32.mrf.mxu2 }
 0x19d   : > { %v1147_v45 = vadd.f32 %v1146_v44, %v1066_v47  ;;  %1267 = vmatmul.f32.gmra.mxu0 %v1266_v55  ;;  %1392 = vmatmul.f32.gmra.mxu1 %v1270_v37  ;;  %v1271_v50 = vsub.f32 %v1200_v42, %v1270_v37 }
 0x19f   : > { %v1196_v30 = vadd.f32 %v1195_v62, %v1147_v45  ;;  %1460 = vmatmul.f32.gmra.mxu2 %v1271_v50  ;;  %v1272_v16 = vand.u32 4294901760, %v1271_v50 }
 0x1a1   : > { %v1201_v19 = vmax.f32 %v1196_v30, 0.0  ;;  %1516 = vmatmul.f32.gmra.mxu3 %v1272_v16  ;;  %v1273_v9 = vsub.f32 %v1271_v50, %v1272_v16 }
 0x1a3   : > { %v1278_v28 = vand.u32 4294901760, %v1201_v19  ;;  %v1274_v41 = vand.u32 4294901760, %v1273_v9 }
 0x1a5   : > { %1275 = vmatmul.f32.gmra.mxu0 %v1274_v41  ;;  %1396 = vmatmul.f32.gmra.mxu1 %v1278_v28  ;;  %v1279_v26 = vsub.f32 %v1201_v19, %v1278_v28 }
 0x1a7   : > { %1465 = vmatmul.f32.gmra.mxu2 %v1279_v26  ;;  %v1280_v35 = vand.u32 4294901760, %v1279_v26 }
 0x1a9   : > { %1522 = vmatmul.f32.gmra.mxu3 %v1280_v35  ;;  %v1281_v48 = vsub.f32 %v1279_v26, %v1280_v35 }
 0x1ab   : > { %v1282_v59 = vand.u32 4294901760, %v1281_v48 }
 0x1ad   : > { %1283 = vmatmul.f32.gmra.mxu0 %v1282_v59  ;;  %1640 = vmatmul.f32.vlgmr.msra.gmra.mxu1 %v2695_v21 }
 0x1af   : > { %1599 = vmatmul.f32.vlgmr.msra.gmra.mxu2 %v1270_v37 }
 0x1b1   : > { %1648 = vmatmul.f32.vlgmr.msra.gmra.mxu3 %v1270_v37 }
 0x1b5   : > { %1591 = vmatmul.f32.vlgmr.msra.gmra.mxu0 %v2695_v21  ;;  %1644 = vmatmul.f32.gmra.mxu1 %v1262_v43 }
 0x1b7   : > { %1603 = vmatmul.f32.gmra.mxu2 %v1278_v28 }
 0x1b9   : > { %1652 = vmatmul.f32.gmra.mxu3 %v1278_v28 }
 0x1bd   : > { %1595 = vmatmul.f32.gmra.mxu0 %v1262_v43 }
 0x20a   : > { %v1385_v13 = vpop.f32.mrf.mxu1 }
 0x212   : > { %v1260_v29 = vpop.f32.mrf.mxu0  ;;  %v1451_v56 = vpop.f32.mrf.mxu2 }
 0x213   : > { %v1389_v6 = vpop.f32.mrf.mxu1  ;;  %v1261_v15 = vadd.f32 %v1769_v12, %v1260_v29 }
 0x214   : > { %v1505_v7 = vpop.f32.mrf.mxu3 }
 0x215   : > { %v1386_v27 = vadd.f32 %v1385_v13, %v1261_v15 }
 0x217   : > { %v1452_v17 = vadd.f32 %v1451_v56, %v1386_v27 }
 0x219   : > { %v1506_v33 = vadd.f32 %v1505_v7, %v1452_v17 }
 0x21a   : > { %v1268_v32 = vpop.f32.mrf.mxu0  ;;  %v1456_v20 = vpop.f32.mrf.mxu2 }
 0x21b   : > { %v1393_v52 = vpop.f32.mrf.mxu1  ;;  %v1269_v24 = vadd.f32 %v1769_v12, %v1268_v32 }
 0x21c   : > { %v1511_v23 = vpop.f32.mrf.mxu3 }
 0x21d   : > { %v1390_v34 = vadd.f32 %v1389_v6, %v1269_v24 }
 0x21f   : > { %v1457_v43 = vadd.f32 %v1456_v20, %v1390_v34 }
 0x221   : > { %v1512_v61 = vadd.f32 %v1511_v23, %v1457_v43 }
 0x222   : > { %v1276_v49 = vpop.f32.mrf.mxu0  ;;  %v1461_v31 = vpop.f32.mrf.mxu2 }
 0x223   : > { %v1397_v10 = vpop.f32.mrf.mxu1  ;;  %v1277_v2 = vadd.f32 %v1769_v12, %v1276_v49 }
 0x224   : > { %v1517_v8 = vpop.f32.mrf.mxu3 }
 0x225   : > { %v1394_v25 = vadd.f32 %v1393_v52, %v1277_v2 }
 0x227   : > { %v1462_v38 = vadd.f32 %v1461_v31, %v1394_v25 }
 0x229   : > { %v1518_v57 = vadd.f32 %v1517_v8, %v1462_v38 }
 0x22a   : > { %v1284_v58 = vpop.f32.mrf.mxu0  ;;  %v1466_v1 = vpop.f32.mrf.mxu2 }
 0x22b   : > { %v1285_v22 = vadd.f32 %v1769_v12, %v1284_v58  ;;  %v1641_v51 = vpop.f32.mrf.mxu1 }
 0x22c   : > { %v1523_v21 = vpop.f32.mrf.mxu3 }
 0x22d   : > { %v1398_v46 = vadd.f32 %v1397_v10, %v1285_v22 }
 0x22f   : > { %v1467_v53 = vadd.f32 %v1466_v1, %v1398_v46 }
 0x231   : > { %v1524_v14 = vadd.f32 %v1523_v21, %v1467_v53 }
 0x232   : > { %v1592_v63 = vpop.f32.mrf.mxu0  ;;  %v1600_v18 = vpop.f32.mrf.mxu2 }
 0x233   : > { %v1593_v0 = vadd.f32 %v1592_v63, %v1506_v33  ;;  %v1601_v3 = vadd.f32 %v1600_v18, %v1518_v57  ;;  %v1645_v40 = vpop.f32.mrf.mxu1 }
 0x234   : > { %v1649_v39 = vpop.f32.mrf.mxu3 }
 0x235   : > { %v1642_v60 = vadd.f32 %v1641_v51, %v1593_v0  ;;  %v1650_v37 = vadd.f32 %v1649_v39, %v1601_v3 }
 0x237   : > { %1656 = vst [vmem:[%s280_s11] sm:$0xff] %v1642_v60 }
 0x238   : > { %1658 = vst [vmem:[%s280_s11 + $0x10] sm:$0xff] %v1650_v37 }
 0x23a   : > { %v1596_v4 = vpop.f32.mrf.mxu0  ;;  %v1604_v11 = vpop.f32.mrf.mxu2 }
 0x23b   : > { %v1597_v5 = vadd.f32 %v1596_v4, %v1512_v61  ;;  %v1605_v42 = vadd.f32 %v1604_v11, %v1524_v14 }
 0x23c   : > { %v1653_v54 = vpop.f32.mrf.mxu3 }
 0x23d   : > { %v1646_v36 = vadd.f32 %v1645_v40, %v1597_v5  ;;  %v1654_v47 = vadd.f32 %v1653_v54, %v1605_v42 }
 0x23f   : > { %1657 = vst [vmem:[%s280_s11 + $0x8] sm:$0xff] %v1646_v36 }
 0x240   : > { %1659 = vst [vmem:[%s280_s11 + $0x18] sm:$0xff] %v1654_v47 }
 0x241 PF: > { %s17_s24 = sadd.s32 1, %s1776_s24  }
 0x242   : > { %p14_p4 = scmp.ge.s32.totalorder %s17_s24, 4  }
 0x244   :  { %16 = sbr.rel (!%p14_p4) target bundleno = 1 (0x1), region = 78 }

</bundles_post_ra>
